<compile_context>
chip_gen: v7x
topology: tpu7x:2x2x1
jax: 0.10.0
libtpu: 0.0.40
codegen_flags: <defaults>
</compile_context>

<pallas_src>
import functools

import jax
import jax.numpy as jnp
from jax.experimental import pallas as pl
from jax.experimental.pallas import tpu as pltpu

N_CLASSES = 10
PAD = 128          # lane-padded output width (one full vreg lane width)
SUBLANE = 8        # f32 sublane granularity


def classical_kernel(x_ref, w_ref, b_ref, out_ref):
    # x_ref:   (TM, E)    batch tile of flattened examples (f32 or bf16)
    # w_ref:   (E, PAD)   fused (projection @ head) weight, zero-padded 10 -> PAD
    # b_ref:   (1, PAD)   head bias, zero-padded (f32)
    # out_ref: (TM, PAD)  log-softmax over the first N_CLASSES lanes; padded lanes = 0.0
    x = x_ref[...]

    # single fused matmul on the MXU, f32 accumulation
    logits = jnp.dot(x, w_ref[...], preferred_element_type=jnp.float32) + b_ref[...]

    # log-softmax over the valid 10 lanes (== LogSoftmax(dim=0) of the per-example 10-vector)
    lane = jax.lax.broadcasted_iota(jnp.int32, logits.shape, 1)
    valid = lane < N_CLASSES
    neg_big = jnp.float32(-1e30)                     # avoid -inf in stored output
    masked = jnp.where(valid, logits, neg_big)
    m = jnp.max(masked, axis=-1, keepdims=True)
    ex = jnp.where(valid, jnp.exp(masked - m), 0.0)
    lse = jnp.log(jnp.sum(ex, axis=-1, keepdims=True)) + m
    # padded lanes get 0.0 so the (TM, PAD) slab is safe to consume whole downstream
    out_ref[...] = jnp.where(valid, logits - lse, 0.0)


def prepare_params(w_proj, w_out, b_out, compute_dtype=jnp.float32):
    """One-time weight prep (hoisted out of the per-call path).

    w_proj: (H, E) random-projection weight (the `self.model` stand-in, bias-free)
    w_out:  (10, H) output-head weight;  b_out: (10,) output-head bias
    Returns (w_fused (E, PAD) in compute_dtype, b_pad (1, PAD) f32).
    """
    H, E = w_proj.shape
    w_out_pad = jnp.zeros((PAD, H), jnp.float32).at[:N_CLASSES].set(w_out.astype(jnp.float32))
    # Exact fusion of the two linear layers: logits = x @ (w_proj^T @ w_out_pad^T) + b
    w_fused = jnp.transpose(w_proj.astype(jnp.float32)) @ jnp.transpose(w_out_pad)   # (E, PAD)
    b_pad = jnp.zeros((1, PAD), jnp.float32).at[0, :N_CLASSES].set(b_out.astype(jnp.float32))
    return w_fused.astype(compute_dtype), b_pad


@functools.partial(jax.jit, static_argnames=("tm",))
def classical_forward(x_batch, w_fused, b_pad, *, tm=128):
    """x_batch: (B, *example_shape).  Returns (B, 10) log-probabilities."""
    B = x_batch.shape[0]
    E, _ = w_fused.shape
    x2 = x_batch.reshape(B, E).astype(w_fused.dtype)

    # pad batch to a sublane multiple and choose the M tile (<=128 rows; 128 saturates v5e MXU)
    Bp = ((B + SUBLANE - 1) // SUBLANE) * SUBLANE
    tm_eff = min(tm, Bp)
    Bp = ((Bp + tm_eff - 1) // tm_eff) * tm_eff
    if Bp != B:
        x2 = jnp.pad(x2, ((0, Bp - B), (0, 0)))

    itemsize = jnp.dtype(w_fused.dtype).itemsize
    cost = pl.CostEstimate(
        flops=2 * Bp * E * PAD,
        transcendentals=Bp * PAD,
        bytes_accessed=Bp * E * itemsize + E * PAD * itemsize + PAD * 4 + Bp * PAD * 4,
    )

    out = pl.pallas_call(
        classical_kernel,
        out_shape=jax.ShapeDtypeStruct((Bp, PAD), jnp.float32),
        grid=(Bp // tm_eff,),
        in_specs=[
            pl.BlockSpec((tm_eff, E), lambda i: (i, 0)),   # batch tile
            pl.BlockSpec((E, PAD), lambda i: (0, 0)),      # fused weight, VMEM-resident
            pl.BlockSpec((1, PAD), lambda i: (0, 0)),      # bias, VMEM-resident
        ],
        out_specs=pl.BlockSpec((tm_eff, PAD), lambda i: (i, 0)),
        compiler_params=pltpu.CompilerParams(
            dimension_semantics=("parallel",)),            # v7x: shard M across both TCs
        cost_estimate=cost,
    )(x2, w_fused, b_pad)

    return out[:B, :N_CLASSES]


def reference_forward(x_batch, w_proj, w_out, b_out):
    """Pure-JAX reference of the original per-example forward, vmapped over the batch."""
    B = x_batch.shape[0]
    xf = x_batch.reshape(B, -1).astype(jnp.float32)
    h = xf @ w_proj.T                      # Linear(E, H, bias=False)  (self.model stand-in)
    logits = h @ w_out.T + b_out           # Linear(H, 10, bias=True)
    return jax.nn.log_softmax(logits, axis=-1)   # == LogSoftmax(dim=0) per example


if __name__ == "__main__":
    # config: model_aug_config = {'n_hidden': 128, 'n_inputs': 1}; example = (1, 16, 16) -> E = 256
    key = jax.random.PRNGKey(0)
    k_x, k_wp, k_wo, k_bo = jax.random.split(key, 4)

    B, E, H = 8, 256, 128
    x = jax.random.normal(k_x, (B, 1, 16, 16), dtype=jnp.float32)
    w_proj = jax.random.normal(k_wp, (H, E), dtype=jnp.float32) / jnp.sqrt(E)   # rand_proj_layer.weight
    w_out = jax.random.normal(k_wo, (N_CLASSES, H), dtype=jnp.float32) / jnp.sqrt(H)
    b_out = jax.random.normal(k_bo, (N_CLASSES,), dtype=jnp.float32) * 0.01

    y_ref = reference_forward(x, w_proj, w_out, b_out)

    # f32 operand path (v5e-friendly, tight tolerance)
    w_f32, b_pad = prepare_params(w_proj, w_out, b_out, compute_dtype=jnp.float32)
    y_f32 = classical_forward(x, w_f32, b_pad)
    jax.block_until_ready(y_f32)
    assert y_f32.shape == (B, N_CLASSES)
    assert jnp.allclose(y_f32, y_ref, atol=1e-4, rtol=1e-4), (y_f32, y_ref)

    # bf16 operand path (v6e/v7x: half weight/activation DMA, f32 MXU accumulation)
    w_bf16, b_pad2 = prepare_params(w_proj, w_out, b_out, compute_dtype=jnp.bfloat16)
    y_bf16 = classical_forward(x, w_bf16, b_pad2)
    jax.block_until_ready(y_bf16)
    assert y_bf16.shape == (B, N_CLASSES)
    assert jnp.allclose(y_bf16, y_ref, atol=3e-2, rtol=3e-2), (y_bf16, y_ref)

    print("KERNEL_OK")
</pallas_src>

<mosaic_0001>
module attributes {stable_mosaic.version = 11 : i64} {
  func.func @classical_kernel(%arg0: i32, %arg1: memref<8x256xf32, #tpu.memory_space<vmem>>, %arg2: memref<256x128xf32, #tpu.memory_space<vmem>>, %arg3: memref<1x128xf32, #tpu.memory_space<vmem>>, %arg4: memref<8x128xf32, #tpu.memory_space<vmem>>) attributes {dimension_semantics = [#tpu.dimension_semantics<parallel>], iteration_bounds = array<i64: 1>, scalar_prefetch = 0 : i64, scratch_operands = 0 : i64, tpu.core_type = #tpu.core_type<tc>, window_params = [{transform_indices = @transform_0, window_bounds = array<i64: 8, 256>}, {pipeline_mode = #tpu.pipeline_mode<synchronous>, transform_indices = @transform_1, window_bounds = array<i64: 256, 128>}, {pipeline_mode = #tpu.pipeline_mode<synchronous>, transform_indices = @transform_2, window_bounds = array<i64: 1, 128>}, {transform_indices = @transform_3, window_bounds = array<i64: 8, 128>}]} {
    %c0 = arith.constant 0 : index
    %c0_0 = arith.constant 0 : index
    %0 = vector.load %arg1[%c0, %c0_0] : memref<8x256xf32, #tpu.memory_space<vmem>>, vector<8x256xf32>
    %c0_1 = arith.constant 0 : index
    %c0_2 = arith.constant 0 : index
    %1 = vector.load %arg2[%c0_1, %c0_2] : memref<256x128xf32, #tpu.memory_space<vmem>>, vector<256x128xf32>
    %cst = arith.constant dense<0.000000e+00> : vector<8x128xf32>
    %2 = tpu.matmul %0, %1, %cst {dimension_numbers = #tpu.dot_dimension_numbers<[1], [0], [0], [1], [0, 0, 1, 1], [], []>} : vector<8x256xf32>, vector<256x128xf32>, vector<8x128xf32> -> vector<8x128xf32>
    %c0_3 = arith.constant 0 : index
    %c0_4 = arith.constant 0 : index
    %3 = vector.load %arg3[%c0_3, %c0_4] : memref<1x128xf32, #tpu.memory_space<vmem>>, vector<1x128xf32>
    %4 = vector.broadcast %3 : vector<1x128xf32> to vector<8x128xf32>
    %5 = arith.addf %2, %4 : vector<8x128xf32>
    %6 = tpu.iota {dimensions = array<i32: 1>} : vector<8x128xi32>
    %c10_i32 = arith.constant 10 : i32
    %7 = vector.broadcast %c10_i32 : i32 to vector<8x128xi32>
    %8 = arith.cmpi slt, %6, %7 : vector<8x128xi32>
    %cst_5 = arith.constant -1.000000e+30 : f32
    %9 = vector.broadcast %cst_5 : f32 to vector<8x128xf32>
    %10 = arith.select %8, %5, %9 : vector<8x128xi1>, vector<8x128xf32>
    %cst_6 = arith.constant dense<0xFF800000> : vector<8xf32>
    %11 = vector.multi_reduction <maximumf>, %10, %cst_6 [1] : vector<8x128xf32> to vector<8xf32>
    %12 = vector.shape_cast %11 : vector<8xf32> to vector<8x1xf32>
    %13 = vector.broadcast %12 : vector<8x1xf32> to vector<8x128xf32>
    %14 = arith.subf %10, %13 : vector<8x128xf32>
    %15 = math.exp %14 : vector<8x128xf32>
    %cst_7 = arith.constant 0.000000e+00 : f32
    %16 = vector.broadcast %cst_7 : f32 to vector<8x128xf32>
    %17 = arith.select %8, %15, %16 : vector<8x128xi1>, vector<8x128xf32>
    %cst_8 = arith.constant dense<0.000000e+00> : vector<8xf32>
    %18 = vector.multi_reduction <add>, %17, %cst_8 [1] : vector<8x128xf32> to vector<8xf32>
    %19 = vector.shape_cast %18 : vector<8xf32> to vector<8x1xf32>
    %20 = math.log %19 : vector<8x1xf32>
    %21 = arith.addf %20, %12 : vector<8x1xf32>
    %22 = vector.broadcast %21 : vector<8x1xf32> to vector<8x128xf32>
    %23 = arith.subf %5, %22 : vector<8x128xf32>
    %cst_9 = arith.constant 0.000000e+00 : f32
    %24 = vector.broadcast %cst_9 : f32 to vector<8x128xf32>
    %25 = arith.select %8, %23, %24 : vector<8x128xi1>, vector<8x128xf32>
    %c0_10 = arith.constant 0 : index
    %c0_11 = arith.constant 0 : index
    %26 = vector.load %arg4[%c0_10, %c0_11] : memref<8x128xf32, #tpu.memory_space<vmem>>, vector<8x128xf32>
    tpu.vector_store %arg4[%c0_10, %c0_11], %25 {strides = array<i32>} : memref<8x128xf32, #tpu.memory_space<vmem>>, vector<8x128xf32>,
    return
  }
  func.func @transform_0(%arg0: i32) -> (i32, i32) {
    %c0_i32 = arith.constant 0 : i32
    %c0_i32_0 = arith.constant 0 : i32
    return %arg0, %c0_i32 : i32, i32
  }
  func.func @transform_1(%arg0: i32) -> (i32, i32) {
    %c0_i32 = arith.constant 0 : i32
    %c0_i32_0 = arith.constant 0 : i32
    %c0_i32_1 = arith.constant 0 : i32
    return %c0_i32, %c0_i32_0 : i32, i32
  }
  func.func @transform_2(%arg0: i32) -> (i32, i32) {
    %c0_i32 = arith.constant 0 : i32
    %c0_i32_0 = arith.constant 0 : i32
    %c0_i32_1 = arith.constant 0 : i32
    return %c0_i32, %c0_i32_0 : i32, i32
  }
  func.func @transform_3(%arg0: i32) -> (i32, i32) {
    %c0_i32 = arith.constant 0 : i32
    %c0_i32_0 = arith.constant 0 : i32
    return %arg0, %c0_i32 : i32, i32
  }
}

</mosaic_0001>

<bundles_post_ra>
// kernel: classical_forward.1
= control target key start
LH: loop header
LB: loop body
LE: loop exit
PB: predicated region body
PF: predicated region fallthrough
CT: control target
= control target key end

     0   :  { %8 = vsyncpa [#allocation3], 0  ;;  %s357_s0 = inlined_call_operand.vmem [shape: f32[8,256], index: 0, kind: input, shape index: {}]   ;;  %s358_s1 = inlined_call_operand.hbm [shape: f32[256,128], index: 1, kind: input, shape index: {}]   ;;  %s359_s2 = inlined_call_operand.vmem [shape: f32[1,128], index: 2, kind: input, shape index: {}]   ;;  %s360_s3 = inlined_call_operand.hbm [shape: f32[8,128], index: 3, kind: output, shape index: {}]  }
   0x1   :  { %9 = vsyncpa [#allocation4], 0  ;;  %s297_s12 = smov [#allocation2]   ;;  %s249_s16 = scalar_lea.hbm %s358_s1, 4096 }
   0x2   :  { %s17_s13 = sshll.u32 %s297_s12, 4  ;;  %p250_p0 = scmp.ne.s32.totalorder %s358_s1, %s249_s16  ;;  %s18_s13 = int_to_ptr.vmem [resolvable:$true] %s17_s13 }
   0x3   :  { %p253_p1 = scmp.lt.u32.totalorder %s249_s16, %s358_s1 }
   0x5   :  { %p255_p2 = pnand %p253_p1, %p250_p0 }
   0x7   :  { %258 = shalt.err (!%p255_p2)
}
   0x8   :  { %s259_s21 = scalar_lea.vmem %s18_s13, 4096  ;;  %p264_p4 = scmp.lt.s32.totalorder %s18_s13, %s18_s13 }
   0x9   :  { %p260_p3 = scmp.ne.s32.totalorder %s18_s13, %s259_s21  ;;  %p265_p5 = scmp.lt.s32.totalorder %s259_s21, %s259_s21 }
   0xb   :  { %p266_p6 = por %p265_p5, %p264_p4 }
   0xd   :  { %p267_p7 = pnand %p266_p6, %p260_p3 }
   0xf   :  { %270 = shalt.err (!%p267_p7)
}
  0x10   :  { %s298_s22 = smov 128   ;;  %s299_s23 = smov 8  }
  0x11   :  { %23 = dma.hbm_to_vmem [thread:$0]  %s358_s1, 4096, %s18_s13, [#allocation3], %s298_s22, %s298_s22, %s299_s23  }
  0x12   :  { %293 = dma.done.wait [#allocation3], 4096  }
  0x13   :  { %294 = vsyncadd [#allocation3], 4294963200  ;;  %v47_v0 = vld [vmem:[#allocation2 + $0x80] sm:$0xff]  ;;  %v48_v1 = vld [vmem:[#allocation2 + $0x88] sm:$0xff]  ;;  %v140_v50 = vlaneseq }
  0x14   :  { %v31_v2 = vld [vmem:[#allocation2] sm:$0xff]  ;;  %v209_v3 = vpack.c.bf16 %v48_v1, %v47_v0  ;;  %v32_v4 = vld [vmem:[#allocation2 + $0x8] sm:$0xff]  ;;  %v49_v5 = vld [vmem:[#allocation2 + $0x90] sm:$0xff] }
  0x15   :  { %v50_v6 = vld [vmem:[#allocation2 + $0x98] sm:$0xff]  ;;  %v211_v7 = vpack.c.bf16 %v32_v4, %v31_v2  ;;  %v33_v9 = vld [vmem:[#allocation2 + $0x10] sm:$0xff]  ;;  %v51_v11 = vld [vmem:[#allocation2 + $0xa0] sm:$0xff]  ;;  %v141_v51 = vand.u32 127, %v140_v50 }
  0x16   :  { %v213_v8 = vpack.c.bf16 %v50_v6, %v49_v5  ;;  %v34_v10 = vld [vmem:[#allocation2 + $0x18] sm:$0xff]  ;;  %210 = vmatprep.subr.bf16.mxu0 %v209_v3  ;;  %v52_v12 = vld [vmem:[#allocation2 + $0xa8] sm:$0xff]  ;;  %v35_v15 = vld [vmem:[#allocation2 + $0x20] sm:$0xff] }
  0x17   :  { %212 = vmatpush3.bf16.msra.mxu0 %v211_v7  ;;  %v215_v13 = vpack.c.bf16 %v34_v10, %v33_v9  ;;  %v217_v14 = vpack.c.bf16 %v52_v12, %v51_v11  ;;  %v36_v16 = vld [vmem:[#allocation2 + $0x28] sm:$0xff]  ;;  %v53_v17 = vld [vmem:[#allocation2 + $0xb0] sm:$0xff]  ;;  %v54_v18 = vld [vmem:[#allocation2 + $0xb8] sm:$0xff]  ;;  %vm142_vm0 = vcmp.lt.s32.totalorder %v141_v51, 10 }
  0x18   :  { %214 = vmatprep.subr.bf16.mxu0 %v213_v8  ;;  %v219_v19 = vpack.c.bf16 %v36_v16, %v35_v15  ;;  %v221_v20 = vpack.c.bf16 %v54_v18, %v53_v17  ;;  %v37_v21 = vld [vmem:[#allocation2 + $0x30] sm:$0xff]  ;;  %v38_v22 = vld [vmem:[#allocation2 + $0x38] sm:$0xff]  ;;  %v55_v23 = vld [vmem:[#allocation2 + $0xc0] sm:$0xff] }
  0x19   :  { %v56_v24 = vld [vmem:[#allocation2 + $0xc8] sm:$0xff]  ;;  %v223_v26 = vpack.c.bf16 %v38_v22, %v37_v21  ;;  %v39_v28 = vld [vmem:[#allocation2 + $0x40] sm:$0xff]  ;;  %v57_v30 = vld [vmem:[#allocation2 + $0xd0] sm:$0xff] }
  0x1a   :  { %v30_v25 = vld [vmem:[%s357_s0 + $0x8] sm:$0xff]  ;;  %v225_v27 = vpack.c.bf16 %v56_v24, %v55_v23  ;;  %v58_v31 = vld [vmem:[#allocation2 + $0xd8] sm:$0xff]  ;;  %v41_v34 = vld [vmem:[#allocation2 + $0x50] sm:$0xff] }
  0x1b   :  { %216 = vmatpush3.bf16.msra.mxu0 %v215_v13  ;;  %134 = vmatprep.mubr.f32.mxu0 %v30_v25  ;;  %v40_v29 = vld [vmem:[#allocation2 + $0x48] sm:$0xff]  ;;  %v229_v33 = vpack.c.bf16 %v58_v31, %v57_v30  ;;  %v42_v35 = vld [vmem:[#allocation2 + $0x58] sm:$0xff]  ;;  %v59_v36 = vld [vmem:[#allocation2 + $0xe0] sm:$0xff] }
  0x1c   :  { %218 = vmatprep.subr.bf16.mxu0 %v217_v14  ;;  %v227_v32 = vpack.c.bf16 %v40_v29, %v39_v28  ;;  %v60_v37 = vld [vmem:[#allocation2 + $0xe8] sm:$0xff]  ;;  %v231_v38 = vpack.c.bf16 %v42_v35, %v41_v34  ;;  %v43_v40 = vld [vmem:[#allocation2 + $0x60] sm:$0xff]  ;;  %v61_v42 = vld [vmem:[#allocation2 + $0xf0] sm:$0xff] }
  0x1d   :  { %v233_v39 = vpack.c.bf16 %v60_v37, %v59_v36  ;;  %v44_v41 = vld [vmem:[#allocation2 + $0x68] sm:$0xff]  ;;  %v62_v43 = vld [vmem:[#allocation2 + $0xf8] sm:$0xff]  ;;  %v45_v46 = vld [vmem:[#allocation2 + $0x70] sm:$0xff] }
  0x1e   :  { %v235_v44 = vpack.c.bf16 %v44_v41, %v43_v40  ;;  %v237_v45 = vpack.c.bf16 %v62_v43, %v61_v42  ;;  %v46_v47 = vld [vmem:[#allocation2 + $0x78] sm:$0xff]  ;;  %v29_v49 = vld [vmem:[%s357_s0] sm:$0xff]  ;;  %s300_s0 = smov [#allocation5]  }
  0x1f   :  { %220 = vmatpush3.bf16.msra.mxu0 %v219_v19  ;;  %v239_v48 = vpack.c.bf16 %v46_v47, %v45_v46  ;;  %v173_v54 = vld [vmem:[%s359_s2] ss:$0 sm:$0xff]  ;;  %s164_s2 = sshll.u32 %s300_s0, 4  ;;  %s165_s2 = int_to_ptr.vmem [resolvable:$true] %s164_s2 }
  0x20   :  { %222 = vmatprep.subr.bf16.mxu0 %v221_v20  ;;  %s271_s4 = scalar_lea.vmem %s165_s2, 128  ;;  %p276_p9 = scmp.lt.s32.totalorder %s165_s2, %s165_s2 }
  0x21   :  { %p272_p8 = scmp.ne.s32.totalorder %s165_s2, %s271_s4  ;;  %p277_p10 = scmp.lt.s32.totalorder %s271_s4, %s271_s4 }
  0x23   :  { %224 = vmatpush3.bf16.msra.mxu0 %v223_v26  ;;  %p278_p11 = por %p277_p10, %p276_p9 }
  0x24   :  { %226 = vmatprep.subr.bf16.mxu0 %v225_v27 }
  0x25   :  { %p279_p12 = pnand %p278_p11, %p272_p8 }
  0x27   :  { %228 = vmatpush3.bf16.msra.mxu0 %v227_v32 }
  0x28   :  { %230 = vmatprep.subr.bf16.mxu0 %v229_v33 }
  0x2b   :  { %232 = vmatpush3.bf16.msra.mxu0 %v231_v38 }
  0x2c   :  { %234 = vmatprep.subr.bf16.mxu0 %v233_v39 }
  0x2f   :  { %236 = vmatpush3.bf16.msra.mxu0 %v235_v44 }
  0x30   :  { %238 = vmatprep.subr.bf16.mxu0 %v237_v45 }
  0x33   :  { %240 = vmatpush3.bf16.msra.mxu0 %v239_v48 }
  0x36   :  { %135 = vmatmul.mubr.f32.vlgmr.msra.gmra.mrb[0].mxu0 %v29_v49 }
 0x109   :  { %v206_v52 = vpop.f32.mrb[0].mxu0 }
 0x10a   :  { %v207_v53 = vpop.f32.mrb[1].mxu0 }
 0x10b   :  { %v208_v55 = vadd.f32 %v207_v53, %v206_v52 }
 0x10d   :  { %v137_v56 = vadd.f32 %v208_v55, %v173_v54 }
 0x10f   :  { %v143_v57 = vsel %vm142_vm0, %v137_v56, -1e+30 }
 0x110   :  { %144 = vmax.xlane.f32.xlu0 %v143_v57 }
 0x19d   :  { %v145_v58 = vpop.xlane.xlu0 %144 }
 0x19e   :  { %v146_v59 = vsub.f32 %v143_v57, %v145_v58 }
 0x1a0   :  { %v147_v60 = vmul.f32 1.442695, %v146_v59 }
 0x1a2   :  { %245 = vpow2.f32 %v147_v60 }
 0x1ac   :  { %v246_v61 = vpop.eup %245 }
 0x1ad   :  { %v149_v62 = vsel %vm142_vm0, %v246_v61, 0.0 }
 0x1ae   :  { %150 = vadd.xlane.f32.xlu0 %v149_v62 }
 0x23b   :  { %v151_v63 = vpop.xlane.xlu0 %150 }
 0x23c   :  { %247 = vlog2.f32 %v151_v63 }
 0x246   :  { %v248_v0 = vpop.eup %247 }
 0x247   :  { %v153_v1 = vmul.f32 0.6931472, %v248_v0 }
 0x249   :  { %v154_v2 = vadd.f32 %v153_v1, %v145_v58 }
 0x24b   :  { %v155_v3 = vsub.f32 %v137_v56, %v154_v2 }
 0x24d   :  { %v156_v4 = vsel %vm142_vm0, %v155_v3, 0.0 }
 0x24e   :  { %157 = vst [vmem:[#allocation5] sm:$0xff] %v156_v4 }
 0x24f   :  { %282 = shalt.err (!%p279_p12)
}
 0x250   :  { %s283_s7 = scalar_lea.hbm %s360_s3, 128 }
 0x251   :  { %p284_p13 = scmp.ne.s32.totalorder %s360_s3, %s283_s7  ;;  %p287_p0 = scmp.lt.u32.totalorder %s283_s7, %s360_s3 }
 0x253   :  { %p289_p1 = pnand %p287_p0, %p284_p13 }
 0x255   :  { %292 = shalt.err (!%p289_p1)
}
 0x256   :  { %167 = dma.vmem_to_hbm [thread:$0]  %s165_s2, 128, %s360_s3, [#allocation4]  }
 0x257   :  { %295 = dma.done.wait [#allocation4], 128  }
 0x258   :  { %296 = vsyncadd [#allocation4], 4294967168 }
 0x259   :  { %171 = vsyncpa [#allocation3], 1 }
 0x25a   :  { %172 = vsyncpa [#allocation4], 1 }

</bundles_post_ra>
